<compile_context>
chip_gen: v5e
topology: v5e:2x2
jax: 0.10.0
libtpu: 0.0.40
codegen_flags: <defaults>
</compile_context>

<pallas_src>
import functools
import math

import jax
import jax.numpy as jnp
from jax.experimental import pallas as pl
from jax.experimental.pallas import tpu as pltpu


def _supcon_kernel(q_ref, x_ref, tcol_ref, trow_ref, out_ref, *,
                   inv_sqrt_temp, block_rows, batch):
    blk = pl.program_id(0)

    # ---- normalize (fold 1/sqrt(T) into the per-row scale), cast to bf16 for the MXU.
    # K side (full batch): renormalized per row-block; O(B*D) vs the O(tm*B*D) matmul.
    x = x_ref[...].astype(jnp.float32)                                     # (B, D)
    k_scale = jax.lax.rsqrt(jnp.maximum(jnp.sum(x * x, axis=1, keepdims=True), 1e-24))
    kn = (x * (k_scale * inv_sqrt_temp)).astype(jnp.bfloat16)              # (B, D)

    q = q_ref[...].astype(jnp.float32)                                     # (tm, D)
    q_scale = jax.lax.rsqrt(jnp.maximum(jnp.sum(q * q, axis=1, keepdims=True), 1e-24))
    qn = (q * (q_scale * inv_sqrt_temp)).astype(jnp.bfloat16)              # (tm, D)

    # sim[i, j] = <x_i, x_j> / (||x_i|| ||x_j|| T): single bf16 MXU pass, f32 accum.
    sim = jax.lax.dot_general(
        qn, kn, dimension_numbers=(((1,), (1,)), ((), ())),
        preferred_element_type=jnp.float32)                                # (tm, B)

    # ---- masks: one boolean diagonal predicate, one boolean same-label predicate.
    row_ids = jax.lax.broadcasted_iota(jnp.int32, (block_rows, 1), 0) + blk * block_rows
    col_ids = jax.lax.broadcasted_iota(jnp.int32, (1, batch), 1)
    is_diag = row_ids == col_ids                                           # (tm, B)
    same = tcol_ref[...] == trow_ref[...]                                  # (tm, B)

    # ---- denominator excludes the self term; per-row max keeps exp safe for any
    # temperature and the masked diagonal stays consistent with the bf16-rounded sim.
    neg = jnp.float32(-1e30)
    sim_nd = jnp.where(is_diag, neg, sim)                                  # (tm, B)
    row_max = jnp.max(sim_nd, axis=1, keepdims=True)                       # (tm, 1)
    z = sim_nd - row_max                                                   # <= 0 off-diag
    row_sum = jnp.sum(jnp.exp(z), axis=1, keepdims=True)                   # (tm, 1)
    log_denom = jnp.log(row_sum)     # shifted: true log-denominator = log_denom + row_max

    # ---- positives: log_prob = sim - (log_denom + row_max) = z - log_denom.
    pos = same & jnp.logical_not(is_diag)
    pos_cnt = jnp.sum(same.astype(jnp.float32), axis=1, keepdims=True) - 1.0   # (tm, 1)
    pos_z_sum = jnp.sum(jnp.where(pos, z, 0.0), axis=1, keepdims=True)         # (tm, 1)
    mean_log_prob_pos = (pos_z_sum - pos_cnt * log_denom) / jnp.maximum(pos_cnt, 1e-8)

    # Rows past the true batch (padded final row block) contribute nothing.
    valid = row_ids < batch
    out_ref[...] = jnp.where(valid, mean_log_prob_pos, 0.0)


def supervised_contrastive_loss(projections: jax.Array,
                                targets: jax.Array,
                                temperature: float = 0.07,
                                block_rows: int = 256) -> jax.Array:
    """projections: (B, D) float, targets: (B,) int. Returns scalar f32 loss."""
    B, D = projections.shape
    tm = B if B <= block_rows else block_rows
    nb = pl.cdiv(B, tm)

    t = targets.astype(jnp.int32)
    t_col = t.reshape(B, 1)
    t_row = t.reshape(1, B)

    in_bytes = projections.dtype.itemsize
    # Rough per-step working set: pipelined input buffers + f32/bf16 normalized
    # copies + a handful of (tm, B) similarity-sized temporaries.
    est = (2 * B * D * in_bytes + 2 * tm * D * in_bytes
           + 6 * (B + tm) * D + 24 * tm * B + (2 << 20))
    try:
        vmem_phys = int(pltpu.get_tpu_info().vmem_capacity_bytes)
    except Exception:
        vmem_phys = 64 * 1024 * 1024          # conservative: v7x physical VMEM
    vmem_limit = int(min(max(est, 32 * 1024 * 1024), int(0.85 * vmem_phys)))

    cost = pl.CostEstimate(
        flops=2 * B * B * D + 12 * B * B + 8 * B * D,
        transcendentals=B * B + 2 * B,
        bytes_accessed=2 * B * D * in_bytes + 12 * B,
    )

    kernel = functools.partial(
        _supcon_kernel,
        inv_sqrt_temp=float(1.0 / math.sqrt(temperature)),
        block_rows=tm, batch=B)

    mlpp = pl.pallas_call(
        kernel,
        out_shape=jax.ShapeDtypeStruct((B, 1), jnp.float32),
        grid_spec=pltpu.PrefetchScalarGridSpec(
            num_scalar_prefetch=0,
            grid=(nb,),
            in_specs=[
                pl.BlockSpec((tm, D), lambda i: (i, 0)),    # query row block
                pl.BlockSpec((B, D), lambda i: (0, 0)),     # full batch, VMEM-resident
                pl.BlockSpec((tm, 1), lambda i: (i, 0)),    # labels (rows)
                pl.BlockSpec((1, B), lambda i: (0, 0)),     # labels (cols)
            ],
            out_specs=pl.BlockSpec((tm, 1), lambda i: (i, 0)),
        ),
        compiler_params=pltpu.CompilerParams(
            dimension_semantics=("parallel",),
            vmem_limit_bytes=vmem_limit),
        cost_estimate=cost,
    )(projections, projections, t_col, t_row)

    # Per-row mean-log-prob-of-positives -> scalar loss (tiny reduction in XLA).
    return -jnp.sum(mlpp) / B


def _reference(projections, targets, temperature=0.07):
    # Pure-JAX port of the PyTorch forward (f32), for verification.
    x = projections.astype(jnp.float32)
    x = x / jnp.maximum(jnp.sqrt(jnp.sum(x * x, axis=1, keepdims=True)), 1e-12)
    sim = jnp.matmul(x, x.T, precision=jax.lax.Precision.HIGHEST) / temperature
    B = x.shape[0]
    eye = jnp.eye(B, dtype=bool)
    pos_mask = ((targets[:, None] == targets[None, :]) & (~eye)).astype(jnp.float32)
    exp_logits = jnp.exp(sim)
    denom = exp_logits.sum(axis=1, keepdims=True) - jnp.diagonal(exp_logits)[:, None]
    log_prob = sim - jnp.log(denom)
    mlpp = (pos_mask * log_prob).sum(axis=1) / jnp.maximum(pos_mask.sum(axis=1), 1e-8)
    return -mlpp.mean()


if __name__ == "__main__":
    key = jax.random.PRNGKey(0)
    k1, k2 = jax.random.split(key)

    # Small single-block case (matches the module's typical usage).
    B, D = 16, 32
    projections = jax.random.normal(k1, (B, D), dtype=jnp.float32)
    targets = jnp.array([0, 1, 2, 3] * (B // 4), dtype=jnp.int32)  # every anchor has positives

    loss = supervised_contrastive_loss(projections, targets, temperature=0.07)
    loss = jax.block_until_ready(loss)
    ref = _reference(projections, targets, temperature=0.07)

    assert loss.shape == ()
    assert bool(jnp.isfinite(loss)), "non-finite loss"
    # Tolerance accounts for single-pass bf16 MXU inputs (f32 accumulation).
    assert jnp.allclose(loss, ref, atol=1e-2, rtol=1e-2), (float(loss), float(ref))

    # Exercise the multi-row-block "parallel" grid path, including a padded final block.
    B2, D2 = 20, 32
    proj2 = jax.random.normal(k2, (B2, D2), dtype=jnp.float32)
    targets2 = (jnp.arange(B2, dtype=jnp.int32) % 5)
    loss2 = supervised_contrastive_loss(proj2, targets2, temperature=0.07, block_rows=8)
    loss2 = jax.block_until_ready(loss2)
    ref2 = _reference(proj2, targets2, temperature=0.07)
    assert bool(jnp.isfinite(loss2)), "non-finite loss (tiled path)"
    assert jnp.allclose(loss2, ref2, atol=1e-2, rtol=1e-2), (float(loss2), float(ref2))

    print("KERNEL_OK")
</pallas_src>

<mosaic_0001>
module attributes {stable_mosaic.version = 11 : i64} {
  func.func @_supcon_kernel(%arg0: i32, %arg1: memref<16x32xf32, #tpu.memory_space<vmem>>, %arg2: memref<16x32xf32, #tpu.memory_space<vmem>>, %arg3: memref<16x1xi32, #tpu.memory_space<vmem>>, %arg4: memref<1x16xi32, #tpu.memory_space<vmem>>, %arg5: memref<16x1xf32, #tpu.memory_space<vmem>>) attributes {dimension_semantics = [#tpu.dimension_semantics<parallel>], iteration_bounds = array<i64: 1>, scalar_prefetch = 0 : i64, scratch_operands = 0 : i64, tpu.core_type = #tpu.core_type<tc>, window_params = [{transform_indices = @transform_0, window_bounds = array<i64: 16, 32>}, {pipeline_mode = #tpu.pipeline_mode<synchronous>, transform_indices = @transform_1, window_bounds = array<i64: 16, 32>}, {transform_indices = @transform_2, window_bounds = array<i64: 16, 1>}, {pipeline_mode = #tpu.pipeline_mode<synchronous>, transform_indices = @transform_3, window_bounds = array<i64: 1, 16>}, {transform_indices = @transform_4, window_bounds = array<i64: 16, 1>}]} {
    %c0 = arith.constant 0 : index
    %c0_0 = arith.constant 0 : index
    %0 = vector.load %arg2[%c0, %c0_0] : memref<16x32xf32, #tpu.memory_space<vmem>>, vector<16x32xf32>
    %1 = arith.mulf %0, %0 : vector<16x32xf32>
    %cst = arith.constant dense<0.000000e+00> : vector<16xf32>
    %2 = vector.multi_reduction <add>, %1, %cst [1] : vector<16x32xf32> to vector<16xf32>
    %3 = vector.shape_cast %2 : vector<16xf32> to vector<16x1xf32>
    %cst_1 = arith.constant 1.000000e-24 : f32
    %4 = vector.broadcast %cst_1 : f32 to vector<16x1xf32>
    %5 = arith.maximumf %3, %4 : vector<16x1xf32>
    %6 = math.rsqrt %5 : vector<16x1xf32>
    %cst_2 = arith.constant 3.77964473 : f32
    %7 = vector.broadcast %cst_2 : f32 to vector<16x1xf32>
    %8 = arith.mulf %6, %7 : vector<16x1xf32>
    %9 = vector.broadcast %8 : vector<16x1xf32> to vector<16x32xf32>
    %10 = arith.mulf %0, %9 : vector<16x32xf32>
    %11 = arith.truncf %10 : vector<16x32xf32> to vector<16x32xbf16>
    %c0_3 = arith.constant 0 : index
    %c0_4 = arith.constant 0 : index
    %12 = vector.load %arg1[%c0_3, %c0_4] : memref<16x32xf32, #tpu.memory_space<vmem>>, vector<16x32xf32>
    %13 = arith.mulf %12, %12 : vector<16x32xf32>
    %cst_5 = arith.constant dense<0.000000e+00> : vector<16xf32>
    %14 = vector.multi_reduction <add>, %13, %cst_5 [1] : vector<16x32xf32> to vector<16xf32>
    %15 = vector.shape_cast %14 : vector<16xf32> to vector<16x1xf32>
    %cst_6 = arith.constant 1.000000e-24 : f32
    %16 = vector.broadcast %cst_6 : f32 to vector<16x1xf32>
    %17 = arith.maximumf %15, %16 : vector<16x1xf32>
    %18 = math.rsqrt %17 : vector<16x1xf32>
    %cst_7 = arith.constant 3.77964473 : f32
    %19 = vector.broadcast %cst_7 : f32 to vector<16x1xf32>
    %20 = arith.mulf %18, %19 : vector<16x1xf32>
    %21 = vector.broadcast %20 : vector<16x1xf32> to vector<16x32xf32>
    %22 = arith.mulf %12, %21 : vector<16x32xf32>
    %23 = arith.truncf %22 : vector<16x32xf32> to vector<16x32xbf16>
    %cst_8 = arith.constant dense<0.000000e+00> : vector<16x16xf32>
    %24 = tpu.matmul %23, %11, %cst_8 {dimension_numbers = #tpu.dot_dimension_numbers<[1], [1], [0], [0], [0, 0, 1, 0], [], []>} : vector<16x32xbf16>, vector<16x32xbf16>, vector<16x16xf32> -> vector<16x16xf32>
    %25 = tpu.iota {dimensions = array<i32: 0>} : vector<16x1xi32>
    %c16_i32 = arith.constant 16 : i32
    %26 = arith.muli %arg0, %c16_i32 : i32
    %27 = vector.broadcast %26 : i32 to vector<16x1xi32>
    %28 = arith.addi %25, %27 : vector<16x1xi32>
    %29 = tpu.iota {dimensions = array<i32: 1>} : vector<1x16xi32>
    %30 = vector.broadcast %28 : vector<16x1xi32> to vector<16x16xi32>
    %31 = vector.broadcast %29 : vector<1x16xi32> to vector<16x16xi32>
    %32 = arith.cmpi eq, %30, %31 : vector<16x16xi32>
    %c0_9 = arith.constant 0 : index
    %c0_10 = arith.constant 0 : index
    %33 = vector.load %arg3[%c0_9, %c0_10] : memref<16x1xi32, #tpu.memory_space<vmem>>, vector<16x1xi32>
    %c0_11 = arith.constant 0 : index
    %c0_12 = arith.constant 0 : index
    %34 = vector.load %arg4[%c0_11, %c0_12] : memref<1x16xi32, #tpu.memory_space<vmem>>, vector<1x16xi32>
    %35 = vector.broadcast %33 : vector<16x1xi32> to vector<16x16xi32>
    %36 = vector.broadcast %34 : vector<1x16xi32> to vector<16x16xi32>
    %37 = arith.cmpi eq, %35, %36 : vector<16x16xi32>
    %cst_13 = arith.constant -1.000000e+30 : f32
    %38 = vector.broadcast %cst_13 : f32 to vector<16x16xf32>
    %39 = arith.select %32, %38, %24 : vector<16x16xi1>, vector<16x16xf32>
    %cst_14 = arith.constant dense<0xFF800000> : vector<16xf32>
    %40 = vector.multi_reduction <maximumf>, %39, %cst_14 [1] : vector<16x16xf32> to vector<16xf32>
    %41 = vector.shape_cast %40 : vector<16xf32> to vector<16x1xf32>
    %42 = vector.broadcast %41 : vector<16x1xf32> to vector<16x16xf32>
    %43 = arith.subf %39, %42 : vector<16x16xf32>
    %44 = math.exp %43 : vector<16x16xf32>
    %cst_15 = arith.constant dense<0.000000e+00> : vector<16xf32>
    %45 = vector.multi_reduction <add>, %44, %cst_15 [1] : vector<16x16xf32> to vector<16xf32>
    %46 = vector.shape_cast %45 : vector<16xf32> to vector<16x1xf32>
    %47 = math.log %46 : vector<16x1xf32>
    %cst_16 = arith.constant dense<true> : vector<16x16xi1>
    %48 = arith.xori %32, %cst_16 : vector<16x16xi1>
    %49 = arith.andi %37, %48 : vector<16x16xi1>
    %50 = arith.extui %37 : vector<16x16xi1> to vector<16x16xi32>
    %51 = arith.sitofp %50 : vector<16x16xi32> to vector<16x16xf32>
    %cst_17 = arith.constant dense<0.000000e+00> : vector<16xf32>
    %52 = vector.multi_reduction <add>, %51, %cst_17 [1] : vector<16x16xf32> to vector<16xf32>
    %53 = vector.shape_cast %52 : vector<16xf32> to vector<16x1xf32>
    %cst_18 = arith.constant 1.000000e+00 : f32
    %54 = vector.broadcast %cst_18 : f32 to vector<16x1xf32>
    %55 = arith.subf %53, %54 : vector<16x1xf32>
    %cst_19 = arith.constant 0.000000e+00 : f32
    %56 = vector.broadcast %cst_19 : f32 to vector<16x16xf32>
    %57 = arith.select %49, %43, %56 : vector<16x16xi1>, vector<16x16xf32>
    %cst_20 = arith.constant dense<0.000000e+00> : vector<16xf32>
    %58 = vector.multi_reduction <add>, %57, %cst_20 [1] : vector<16x16xf32> to vector<16xf32>
    %59 = vector.shape_cast %58 : vector<16xf32> to vector<16x1xf32>
    %60 = arith.mulf %55, %47 : vector<16x1xf32>
    %61 = arith.subf %59, %60 : vector<16x1xf32>
    %cst_21 = arith.constant 9.99999993E-9 : f32
    %62 = vector.broadcast %cst_21 : f32 to vector<16x1xf32>
    %63 = arith.maximumf %55, %62 : vector<16x1xf32>
    %64 = arith.divf %61, %63 : vector<16x1xf32>
    %c16_i32_22 = arith.constant 16 : i32
    %65 = vector.broadcast %c16_i32_22 : i32 to vector<16x1xi32>
    %66 = arith.cmpi slt, %28, %65 : vector<16x1xi32>
    %cst_23 = arith.constant 0.000000e+00 : f32
    %67 = vector.broadcast %cst_23 : f32 to vector<16x1xf32>
    %68 = arith.select %66, %64, %67 : vector<16x1xi1>, vector<16x1xf32>
    %c0_24 = arith.constant 0 : index
    %c0_25 = arith.constant 0 : index
    %69 = vector.load %arg5[%c0_24, %c0_25] : memref<16x1xf32, #tpu.memory_space<vmem>>, vector<16x1xf32>
    tpu.vector_store %arg5[%c0_24, %c0_25], %68 {strides = array<i32>} : memref<16x1xf32, #tpu.memory_space<vmem>>, vector<16x1xf32>,
    return
  }
  func.func @transform_0(%arg0: i32) -> (i32, i32) {
    %c0_i32 = arith.constant 0 : i32
    %c0_i32_0 = arith.constant 0 : i32
    return %arg0, %c0_i32 : i32, i32
  }
  func.func @transform_1(%arg0: i32) -> (i32, i32) {
    %c0_i32 = arith.constant 0 : i32
    %c0_i32_0 = arith.constant 0 : i32
    %c0_i32_1 = arith.constant 0 : i32
    return %c0_i32, %c0_i32_0 : i32, i32
  }
  func.func @transform_2(%arg0: i32) -> (i32, i32) {
    %c0_i32 = arith.constant 0 : i32
    %c0_i32_0 = arith.constant 0 : i32
    return %arg0, %c0_i32 : i32, i32
  }
  func.func @transform_3(%arg0: i32) -> (i32, i32) {
    %c0_i32 = arith.constant 0 : i32
    %c0_i32_0 = arith.constant 0 : i32
    %c0_i32_1 = arith.constant 0 : i32
    return %c0_i32, %c0_i32_0 : i32, i32
  }
  func.func @transform_4(%arg0: i32) -> (i32, i32) {
    %c0_i32 = arith.constant 0 : i32
    %c0_i32_0 = arith.constant 0 : i32
    return %arg0, %c0_i32 : i32, i32
  }
}

</mosaic_0001>

<bundles_post_ra>
// kernel: tpu_custom_call.1
= control target key start
LH: loop header
LB: loop body
LE: loop exit
PB: predicated region body
PF: predicated region fallthrough
CT: control target
= control target key end

     0   :  { %9 = vsyncpa [#allocation3], 0  ;;  %s309_s18 = smov [#allocation2]   ;;  %s310_s20 = smov 128   ;;  %s414_s0 = inlined_call_operand.vmem [shape: f32[16,32], index: 0, kind: input, shape index: {}]   ;;  %s415_s1 = inlined_call_operand.hbm [shape: f32[16,32], index: 1, kind: input, shape index: {}]   ;;  %s416_s2 = inlined_call_operand.vmem [shape: s32[16,1], index: 2, kind: input, shape index: {}]   ;;  %s417_s3 = inlined_call_operand.vmem [shape: s32[1,16], index: 3, kind: input, shape index: {}]   ;;  %s418_s4 = inlined_call_operand.vmem [shape: f32[16,1], index: 4, kind: output, shape index: {}]  }
   0x1   :  { %s16_s17 = sshll.u32 %s415_s1, 4  ;;  %s18_s19 = sshll.u32 %s309_s18, 4  ;;  %s17_s17 = int_to_ptr.hbm [resolvable:$true] %s16_s17  ;;  %s19_s19 = int_to_ptr.vmem [resolvable:$true] %s18_s19 }
   0x2   :  { %s311_s21 = smov 8  }
   0x3   :  { %24 = dma.hbm_to_vmem [thread:$0]  %s17_s17, 256, %s19_s19, [#allocation3], %s310_s20, %s310_s20, %s311_s21  }
   0x4   :  { %307 = dma.done.wait [#allocation3], 256  }
   0x5   :  { %308 = vsyncadd [#allocation3], 4294967040  ;;  %vm38_vm0 = vcmask 261120   ;;  %v346_v0 = vld [vmem:[%s414_s0] sm:$0xff]  ;;  %v357_v4 = vld [vmem:[%s414_s0 + $0x8] sm:$0xff]  ;;  %v312_v27 = vmov 0   ;;  %v129_v62 = vlaneseq }
   0x6   :  { %v348_v1 = vld [vmem:[#allocation2] sm:$0xff]  ;;  %v74_v2 = vmul.f32 %v346_v0, %v346_v0  ;;  %v359_v5 = vld [vmem:[#allocation2 + $0x8] sm:$0xff]  ;;  %v75_v8 = vmul.f32 %v357_v4, %v357_v4  ;;  %260 = vset.pattern.permute.xlu0 %v312_v27  ;;  %261 = vset.pattern.permute.xlu1 %v312_v27  ;;  %vm313_vm14 = vmmov 1  }
   0x7   :  { %v36_v3 = vmul.f32 %v348_v1, %v348_v1  ;;  %v37_v9 = vmul.f32 %v359_v5, %v359_v5  ;;  %v140_v23 = vld [vmem:[%s416_s2] sm:$0xff]  ;;  %v141_v24 = vld [vmem:[%s416_s2 + $0x8] sm:$0xff]  ;;  %v130_v63 = vshrl.u32 %v129_v62, 7 }
   0x8   :  { %v76_v6 = vsel %vm38_vm0, %v74_v2, 0.0  ;;  %v79_v10 = vsel %vm38_vm0, %v75_v8, 0.0  ;;  %v137_v2 = vand.u32 127, %v129_v62 }
   0x9   :  { %v39_v7 = vsel %vm38_vm0, %v36_v3, 0.0  ;;  %77 = vadd.xlane.f32.xlu1 %v76_v6  ;;  %v42_v11 = vsel %vm38_vm0, %v37_v9, 0.0 }
   0xa   :  { %40 = vadd.xlane.f32.xlu0 %v39_v7  ;;  %vm138_vm13 = vcmp.eq.s32.totalorder %v130_v63, %v137_v2 }
   0xb   :  { %vm177_vm15 = vmxor %vm138_vm13, %vm313_vm14 }
  0x11   :  { %80 = vadd.xlane.f32.xlu1 %v79_v10 }
  0x12   :  { %43 = vadd.xlane.f32.xlu0 %v42_v11 }
  0x26   :  { %144 = vperm.xlu0 %260, %v140_v23  }
  0x2a   :  { %147 = vperm.xlu1 %261, %v141_v24  }
  0x7c   :  { %v78_v12 = vpop.xlane.xlu1 %77 }
  0x7d   :  { %v41_v13 = vpop.xlane.xlu0 %40  ;;  %v82_v14 = vmax.f32 %v78_v12, 1e-24 }
  0x7e   :  { %v45_v15 = vmax.f32 %v41_v13, 1e-24  ;;  %v314_v13 = vmov 0.0  }
  0x7f   :  { %263 = vrsqrt.f32 %v82_v14  ;;  %vm90_vm9 = vweird.f32 %v82_v14 }
  0x80   :  { %265 = vrsqrt.f32 %v45_v15  ;;  %vm53_vm2 = vweird.f32 %v45_v15 }
  0x84   :  { %v81_v16 = vpop.xlane.xlu1 %80 }
  0x85   :  { %v44_v17 = vpop.xlane.xlu0 %43  ;;  %v264_v18 = vpop.eup %263  ;;  %v83_v19 = vmax.f32 %v81_v16, 1e-24 }
  0x86   :  { %v46_v20 = vmax.f32 %v44_v17, 1e-24  ;;  %v266_v21 = vpop.eup %265  ;;  %v85_v25 = vmul.f32 %v264_v18, %v82_v14  ;;  %vm91_vm10 = vweird.f32 %v264_v18 }
  0x87   :  { %v48_v22 = vmul.f32 %v266_v21, %v45_v15  ;;  %267 = vrsqrt.f32 %v83_v19  ;;  %vm54_vm1 = vweird.f32 %v266_v21  ;;  %vm100_vm5 = vweird.f32 %v83_v19  ;;  %vm92_vm12 = vmor %vm90_vm9, %vm91_vm10 }
  0x88   :  { %269 = vrsqrt.f32 %v46_v20  ;;  %v86_v30 = vmul.f32 %v264_v18, %v85_v25  ;;  %vm55_vm3 = vmor %vm53_vm2, %vm54_vm1  ;;  %vm63_vm7 = vweird.f32 %v46_v20 }
  0x89   :  { %v49_v26 = vmul.f32 %v266_v21, %v48_v22 }
  0x8a   :  { %v87_v36 = vmul.f32 0.5, %v86_v30 }
  0x8b   :  { %v50_v28 = vmul.f32 0.5, %v49_v26 }
  0x8c   :  { %v88_v42 = vsub.f32 1.5, %v87_v36 }
  0x8d   :  { %v268_v29 = vpop.eup %267  ;;  %v51_v31 = vsub.f32 1.5, %v50_v28 }
  0x8e   :  { %v270_v32 = vpop.eup %269  ;;  %v95_v33 = vmul.f32 %v268_v29, %v83_v19  ;;  %vm101_vm6 = vweird.f32 %v268_v29  ;;  %v89_v48 = vmul.f32 %v264_v18, %v88_v42 }
  0x8f   :  { %v58_v34 = vmul.f32 %v270_v32, %v46_v20  ;;  %v52_v37 = vmul.f32 %v266_v21, %v51_v31  ;;  %vm64_vm4 = vweird.f32 %v270_v32  ;;  %vm102_vm11 = vmor %vm100_vm5, %vm101_vm6  ;;  %vm154_vm6 = vcmask 130048  }
  0x90   :  { %v96_v35 = vmul.f32 %v268_v29, %v95_v33  ;;  %vm65_vm8 = vmor %vm63_vm7, %vm64_vm4  ;;  %v93_v54 = vsel %vm92_vm12, %v264_v18, %v89_v48 }
  0x91   :  { %v59_v38 = vmul.f32 %v270_v32, %v58_v34  ;;  %v56_v44 = vsel %vm55_vm3, %v266_v21, %v52_v37  ;;  %v104_v58 = vmul.f32 3.7796447, %v93_v54 }
  0x92   :  { %v97_v39 = vmul.f32 0.5, %v96_v35  ;;  %v67_v47 = vmul.f32 3.7796447, %v56_v44 }
  0x93   :  { %v60_v40 = vmul.f32 0.5, %v59_v38  ;;  %v106_v60 = vmul.f32 %v104_v58, %v346_v0 }
  0x94   :  { %v98_v41 = vsub.f32 1.5, %v97_v39  ;;  %v69_v52 = vmul.f32 %v67_v47, %v348_v1  ;;  %v262_v1 = vld [vmem:[%s417_s3] ss:$0 sm:$0xff] }
  0x95   :  { %v61_v43 = vsub.f32 1.5, %v60_v40 }
  0x96   :  { %v99_v45 = vmul.f32 %v268_v29, %v98_v41 }
  0x97   :  { %v62_v46 = vmul.f32 %v270_v32, %v61_v43 }
  0x98   :  { %v103_v51 = vsel %vm102_vm11, %v268_v29, %v99_v45  ;;  %v145_v3 = vpop.permute.xlu0 %144 }
  0x99   :  { %v66_v49 = vsel %vm65_vm8, %v270_v32, %v62_v46  ;;  %v105_v56 = vmul.f32 3.7796447, %v103_v51  ;;  %vm150_vm1 = vcmp.eq.s32.totalorder %v145_v3, %v262_v1 }
  0x9a   :  { %v68_v50 = vmul.f32 3.7796447, %v66_v49  ;;  %vm385_vm2 = vmand %vm150_vm1, %vm177_vm15  ;;  %v250_v14 = vsel %vm150_vm1, 1.0, %v314_v13 }
  0x9b   :  { %v107_v59 = vmul.f32 %v105_v56, %v357_v4  ;;  %v185_v15 = vsel %vm154_vm6, %v250_v14, 0.0 }
  0x9c   :  { %v70_v53 = vmul.f32 %v68_v50, %v359_v5  ;;  %v131_v5 = vadd.s32 8, %v130_v63  ;;  %v148_v0 = vpop.permute.xlu1 %147 }
  0x9d   :  { %v108_v61 = vpack.c.bf16 %v107_v59, %v106_v60  ;;  %vm151_vm4 = vcmp.eq.s32.totalorder %v148_v0, %v262_v1 }
  0x9e   :  { %v71_v55 = vpack.c.bf16 %v70_v53, %v69_v52  ;;  %vm139_vm3 = vcmp.eq.s32.totalorder %v131_v5, %v137_v2  ;;  %v251_v16 = vsel %vm151_vm4, 1.0, %v314_v13 }
  0x9f   :  { %v188_v17 = vsel %vm154_vm6, %v251_v16, 0.0 }
  0xa0   :  { %v113_v57 = vsel %vm38_vm0, %v71_v55, 0 }
  0xa1   :  { %122 = vmatpush.bf16.xpose.msra.mxu0 %v113_v57 }
  0xa8   :  { %249 = vmatmul.msk.bf16.vlgmr.msra.gmra.mxu0 %vm38_vm0, %v108_v61  ;;  %vm178_vm0 = vmxor %vm139_vm3, %vm313_vm14 }
  0xa9   :  { %vm389_vm5 = vmand %vm151_vm4, %vm178_vm0 }
 0x125   :  { %v124_v7 = vpop.f32.mrf.mxu0 }
 0x126   :  { %v152_v8 = vsel %vm138_vm13, -1e+30, %v124_v7  ;;  %vm241_vm13 = vcmask 7168  }
 0x127   :  { %v155_v9 = vsel %vm154_vm6, %v152_v8, -inf }
 0x128   :  { %156 = vmax.xlane.f32.xlu2 %v155_v9 }
 0x12d   :  { %v126_v10 = vpop.f32.mrf.mxu0 }
 0x12e   :  { %v153_v11 = vsel %vm139_vm3, -1e+30, %v126_v10 }
 0x12f   :  { %v158_v12 = vsel %vm154_vm6, %v153_v11, -inf }
 0x130   :  { %159 = vmax.xlane.f32.xlu2 %v158_v12 }
 0x138   :  { %186 = vadd.xlane.f32.xlu2 %v185_v15 }
 0x140   :  { %189 = vadd.xlane.f32.xlu2 %v188_v17 }
 0x19b   :  { %v157_v18 = vpop.xlane.xlu2 %156 }
 0x19c   :  { %v161_v19 = vsub.f32 %v152_v8, %v157_v18 }
 0x19e   :  { %v163_v20 = vmul.f32 1.442695, %v161_v19  ;;  %v193_v21 = vsel %vm385_vm2, %v161_v19, 0.0 }
 0x19f   :  { %v195_v22 = vsel %vm154_vm6, %v193_v21, 0.0 }
 0x1a0   :  { %271 = vpow2.f32 %v163_v20  ;;  %196 = vadd.xlane.f32.xlu1 %v195_v22 }
 0x1a3   :  { %v160_v23 = vpop.xlane.xlu2 %159 }
 0x1a4   :  { %v162_v24 = vsub.f32 %v153_v11, %v160_v23 }
 0x1a6   :  { %v272_v25 = vpop.eup %271  ;;  %v165_v26 = vmul.f32 1.442695, %v162_v24  ;;  %v194_v30 = vsel %vm389_vm5, %v162_v24, 0.0 }
 0x1a7   :  { %v167_v27 = vsel %vm154_vm6, %v272_v25, 0.0  ;;  %v198_v31 = vsel %vm154_vm6, %v194_v30, 0.0 }
 0x1a8   :  { %273 = vpow2.f32 %v165_v26  ;;  %168 = vadd.xlane.f32.xlu2 %v167_v27 }
 0x1ab   :  { %v187_v32 = vpop.xlane.xlu2 %186 }
 0x1ac   :  { %v252_v33 = vadd.f32 -1.0, %v187_v32 }
 0x1ae   :  { %v274_v28 = vpop.eup %273  ;;  %v205_v34 = vmax.f32 %v252_v33, 1e-08 }
 0x1af   :  { %v170_v29 = vsel %vm154_vm6, %v274_v28, 0.0 }
 0x1b0   :  { %171 = vadd.xlane.f32.xlu2 %v170_v29  ;;  %275 = vrcp.f32 %v205_v34  ;;  %vm212_vm7 = vweird.f32 %v205_v34  ;;  %v218_v45 = vand.u32 2147483648, %v205_v34  ;;  %v216_v47 = vand.u32 2147483647, %v205_v34 }
 0x1b2   :  { %v219_v52 = vor.u32 1.1754944e-38, %v218_v45  ;;  %vm217_vm10 = vcmp.eq.f32.partialorder %v216_v47, 8.507059e+37 }
 0x1b3   :  { %v190_v35 = vpop.xlane.xlu2 %189 }
 0x1b4   :  { %v253_v36 = vadd.f32 -1.0, %v190_v35 }
 0x1b6   :  { %v206_v37 = vmax.f32 %v253_v36, 1e-08  ;;  %v276_v38 = vpop.eup %275 }
 0x1b7   :  { %v208_v39 = vmul.f32 %v276_v38, %v205_v34  ;;  %vm213_vm8 = vweird.f32 %v276_v38 }
 0x1b8   :  { %199 = vadd.xlane.f32.xlu2 %v198_v31  ;;  %277 = vrcp.f32 %v206_v37  ;;  %vm214_vm9 = vmor %vm212_vm7, %vm213_vm8  ;;  %vm227_vm11 = vweird.f32 %v206_v37  ;;  %v233_v59 = vand.u32 2147483648, %v206_v37  ;;  %v231_v62 = vand.u32 2147483647, %v206_v37 }
 0x1b9   :  { %v209_v40 = vsub.f32 1.0, %v208_v39 }
 0x1ba   :  { %v234_v1 = vor.u32 1.1754944e-38, %v233_v59  ;;  %vm232_vm15 = vcmp.eq.f32.partialorder %v231_v62, 8.507059e+37 }
 0x1bb   :  { %v210_v43 = vmul.f32 %v276_v38, %v209_v40 }
 0x1bd   :  { %v211_v46 = vadd.f32 %v276_v38, %v210_v43 }
 0x1be   :  { %v278_v41 = vpop.eup %277 }
 0x1bf   :  { %v223_v44 = vmul.f32 %v278_v41, %v206_v37  ;;  %v215_v53 = vsel %vm214_vm9, %v276_v38, %v211_v46  ;;  %vm228_vm12 = vweird.f32 %v278_v41 }
 0x1c0   :  { %v220_v58 = vsel %vm217_vm10, %v219_v52, %v215_v53  ;;  %vm229_vm14 = vmor %vm227_vm11, %vm228_vm12 }
 0x1c1   :  { %v224_v48 = vsub.f32 1.0, %v223_v44 }
 0x1c3   :  { %v225_v55 = vmul.f32 %v278_v41, %v224_v48 }
 0x1c5   :  { %v226_v61 = vadd.f32 %v278_v41, %v225_v55 }
 0x1c7   :  { %v230_v5 = vsel %vm229_vm14, %v278_v41, %v226_v61 }
 0x1c8   :  { %v235_v6 = vsel %vm232_vm15, %v234_v1, %v230_v5 }
 0x213   :  { %v197_v56 = vpop.xlane.xlu1 %196 }
 0x21b   :  { %v169_v42 = vpop.xlane.xlu2 %168 }
 0x21c   :  { %279 = vlog2.f32 %v169_v42 }
 0x222   :  { %v280_v49 = vpop.eup %279 }
 0x223   :  { %v174_v50 = vmul.f32 0.6931472, %v280_v49  ;;  %v172_v51 = vpop.xlane.xlu2 %171 }
 0x224   :  { %281 = vlog2.f32 %v172_v51 }
 0x225   :  { %v201_v54 = vmul.f32 %v252_v33, %v174_v50 }
 0x227   :  { %v203_v57 = vsub.f32 %v197_v56, %v201_v54 }
 0x229   :  { %v221_v60 = vmul.f32 %v220_v58, %v203_v57 }
 0x22a   :  { %v282_v63 = vpop.eup %281 }
 0x22b   :  { %v176_v2 = vmul.f32 0.6931472, %v282_v63  ;;  %242 = vst.msk [vmem:[%s418_s4] sm:$0xff] %vm241_vm13, %v221_v60  ;;  %v200_v4 = vpop.xlane.xlu2 %199 }
 0x22d   :  { %v202_v3 = vmul.f32 %v253_v36, %v176_v2 }
 0x22f   :  { %v204_v0 = vsub.f32 %v200_v4, %v202_v3 }
 0x231   :  { %v236_v7 = vmul.f32 %v235_v6, %v204_v0 }
 0x233   :  { %243 = vst.msk [vmem:[%s418_s4 + $0x8] sm:$0xff] %vm241_vm13, %v236_v7 }
 0x234   :  { %248 = vsyncpa [#allocation3], 1 }

</bundles_post_ra>
